<compile_context>
chip_gen: v7x
topology: tpu7x:2x2x1
jax: 0.10.0
libtpu: 0.0.40
codegen_flags: <defaults>
</compile_context>

<pallas_src>
import jax
import jax.numpy as jnp
from jax.experimental import pallas as pl
from jax.experimental.pallas import tpu as pltpu

LANE = 128
SUBLANE = 8


def _make_msel_kernel(w1, w2, num_channels, tr, sub, r_valid, n_sp_per_p):
    # Plain Python scalars only -> inlined as literals, never captured consts.
    w2f = float(w2)
    widx = [float(w1) * float(c) for c in range(num_channels)]  # w1 folded in
    n_sub = tr // sub

    def kernel(x_ref, y_ref, o_ref):
        # x_ref: (C, TR, 128)   y_ref: (TR, 128)   o_ref: (8, 128) f32
        p = pl.program_id(1)
        s = pl.program_id(2)

        @pl.when(s == 0)
        def _init():
            o_ref[...] = jnp.zeros_like(o_ref)

        # Absolute (logical, unclamped) first row handled by this grid step.
        # Blocks that overhang the true row count are fully masked below.
        row_block0 = (p * n_sp_per_p + s) * tr

        # Row iota for the ragged-tail mask; hoisted out of the sub-chunk loop
        # (JAX does not CSE broadcast_in_dim).
        sub_rows = jax.lax.broadcasted_iota(jnp.int32, (sub, LANE), 0)

        def sub_body(j, carry):
            row0 = pl.multiple_of(j * sub, sub)

            # Running (max, w1*argmax) sweep over channels.  Strict '>' keeps
            # the first maximal channel (torch.max tie-breaking on CPU).
            # Pure VPU compare/select on (SUB, 128) slabs that stay in vregs.
            # NOTE: NaN logits would never be selected (minor divergence from
            # torch argmax NaN propagation).
            best_val = x_ref[0, pl.ds(row0, sub), :]
            best_widx = jnp.zeros((sub, LANE), jnp.float32)
            for c in range(1, num_channels):
                v = x_ref[c, pl.ds(row0, sub), :]
                take = v > best_val
                best_val = jnp.where(take, v, best_val)
                best_widx = jnp.where(take, widx[c], best_widx)

            yv = y_ref[pl.ds(row0, sub), :].astype(jnp.float32)
            diff = best_widx - w2f * yv

            # Mask rows beyond the true spatial extent: the last spatial block
            # (and any duplicated block when P does not divide the block
            # count) reads undefined tail data that must contribute zero.
            rows_left = r_valid - (row_block0 + row0)
            contrib = jnp.where(sub_rows < rows_left, diff * diff, 0.0)

            # Fold SUB rows down to 8 with vreg-aligned static slices (pure
            # VPU adds), then accumulate into the per-(batch, p) output block
            # that stays resident in VMEM across the whole reduction axis.
            part = contrib[0:SUBLANE, :]
            for g in range(1, sub // SUBLANE):
                part = part + contrib[g * SUBLANE:(g + 1) * SUBLANE, :]
            o_ref[...] += part
            return carry

        # fori_loop (not a Python for) so the best_val / best_widx live ranges
        # are bounded to one SUB-row chunk (no per-channel VMEM spill/reload).
        jax.lax.fori_loop(0, n_sub, sub_body, 0)

    return kernel


def msel_loss_pallas(x, y, a: float = 0.5, b: float = 0.5):
    """x: (B, C, H, W) logits, y: (B, H, W) labels (any castable dtype)."""
    B, C, H, W = x.shape
    assert y.shape == (B, H, W)
    assert C < (1 << 24), "argmax index carried exactly in f32 requires C < 2^24"
    S = H * W
    itemsize = jnp.dtype(x.dtype).itemsize
    y_itemsize = jnp.dtype(y.dtype).itemsize

    # Rows of 128 lanes.  Only pad to the next 128-pixel multiple (and to at
    # least 8 rows); this pad is loss-neutral (argmax of an all-zero column is
    # channel 0 and the padded label is 0, so w1*0 - w2*0 == 0).  The large
    # TR-granularity tail is handled by in-kernel masking, NOT by jnp.pad.
    # TODO(synk): when S % 128 != 0 the small residual pad still copies x once;
    # a fully pad-free path needs an in-kernel flat->(rows,128) relayout.
    R = max(-(-S // LANE), SUBLANE)
    S_pad = R * LANE

    x3 = x.reshape(B, C, S)
    y2 = y.reshape(B, S)
    if S_pad != S:
        x3 = jnp.pad(x3, ((0, 0), (0, 0), (0, S_pad - S)))
        y2 = jnp.pad(y2, ((0, 0), (0, S_pad - S)))
    x4 = x3.reshape(B, C, R, LANE)   # free reshape (metadata only)
    y3 = y2.reshape(B, R, LANE)      # y stays in its native (narrow) dtype

    # ~8 MiB x tiles keep the per-grid-step overhead (~0.35 us) well under the
    # per-step HBM DMA time on v5e/v6e/v7x.
    tile_bytes = 8 * 1024 * 1024
    tr_cap = max(SUBLANE,
                 (tile_bytes // (C * LANE * itemsize)) // SUBLANE * SUBLANE)
    if B == 1 and R >= 2 * SUBLANE:
        # With a single batch, make sure there are >= 2 spatial blocks so the
        # two v7x TensorCores both get work.
        half = -(-(R // 2) // SUBLANE) * SUBLANE
        tr_cap = min(tr_cap, half)
    TR = min(tr_cap, (R // SUBLANE) * SUBLANE)   # multiple of 8, <= R
    SUB = min(64, TR)                            # rows per in-register chunk
    TR = (TR // SUB) * SUB                       # TR is a multiple of SUB

    n_blocks = -(-R // TR)            # spatial blocks (last may overhang R)
    P = 2 if n_blocks >= 2 else 1     # v7x: second parallel axis
    n_sp = -(-n_blocks // P)          # reduction steps per (batch, p)
    last_block = n_blocks - 1

    kernel = _make_msel_kernel(a, b, C, TR, SUB, R, n_sp)

    # Clamp the *physical* block index so DMAs always start in-bounds; the
    # kernel masks by the logical index, so clamped duplicates contribute 0.
    def x_map(bi, p, si):
        return (bi, 0, jnp.minimum(p * n_sp + si, last_block), 0)

    def y_map(bi, p, si):
        return (bi, jnp.minimum(p * n_sp + si, last_block), 0)

    def o_map(bi, p, si):
        return (bi, p, 0, 0)

    # Double-buffered x + y tiles + output block, plus slack for internals.
    vmem_bytes = int(2 * (C * TR * LANE * itemsize
                          + TR * LANE * y_itemsize
                          + SUBLANE * LANE * 4) + (4 << 20))

    partials = pl.pallas_call(
        kernel,
        out_shape=jax.ShapeDtypeStruct((B, P, SUBLANE, LANE), jnp.float32),
        grid_spec=pltpu.PrefetchScalarGridSpec(
            num_scalar_prefetch=0,
            grid=(B, P, n_sp),
            in_specs=[
                pl.BlockSpec((None, C, TR, LANE), x_map),
                pl.BlockSpec((None, TR, LANE), y_map),
            ],
            out_specs=pl.BlockSpec((None, None, SUBLANE, LANE), o_map),
        ),
        compiler_params=pltpu.CompilerParams(
            # batch and p axes are independent (megacore-shardable); the
            # innermost spatial axis is the carried reduction -> arbitrary.
            dimension_semantics=("parallel", "parallel", "arbitrary"),
            vmem_limit_bytes=vmem_bytes,
        ),
    )(x4, y3)

    return jnp.sum(partials)


def msel_loss_ref(x, y, a: float = 0.5, b: float = 0.5):
    idx = jnp.argmax(x, axis=1).astype(jnp.float32)   # (B, H, W)
    d = a * idx - b * y.astype(jnp.float32)
    return jnp.sum(d * d)


if __name__ == "__main__":
    key = jax.random.PRNGKey(0)
    kx, ky = jax.random.split(key)

    B, C, H, W = 2, 4, 16, 16
    x = jax.random.normal(kx, (B, C, H, W), dtype=jnp.float32)
    y = jax.random.randint(ky, (B, H, W), 0, C).astype(jnp.int32)

    out = jax.block_until_ready(msel_loss_pallas(x, y, a=0.5, b=0.5))
    ref = jax.block_until_ready(msel_loss_ref(x, y, a=0.5, b=0.5))

    assert jnp.allclose(out, ref, rtol=1e-5, atol=1e-4), (out, ref)
    print("KERNEL_OK")
</pallas_src>

<mosaic_0001>
module attributes {stable_mosaic.version = 11 : i64} {
  func.func @kernel(%arg0: i32, %arg1: i32, %arg2: i32, %arg3: memref<1x4x8x128xf32, #tpu.memory_space<vmem>>, %arg4: memref<1x8x128xi32, #tpu.memory_space<vmem>>, %arg5: memref<1x1x8x128xf32, #tpu.memory_space<vmem>>) attributes {dimension_semantics = [#tpu.dimension_semantics<parallel>, #tpu.dimension_semantics<parallel>, #tpu.dimension_semantics<arbitrary>], iteration_bounds = array<i64: 2, 1, 1>, scalar_prefetch = 0 : i64, scratch_operands = 0 : i64, tpu.core_type = #tpu.core_type<tc>, window_params = [{transform_indices = @transform_0, window_bounds = array<i64: 1, 4, 8, 128>}, {transform_indices = @transform_1, window_bounds = array<i64: 1, 8, 128>}, {transform_indices = @transform_2, window_bounds = array<i64: 1, 1, 8, 128>}]} {
    %c0_i32 = arith.constant 0 : i32
    %0 = arith.cmpi eq, %arg2, %c0_i32 : i32
    %1 = arith.extui %0 : i1 to i32
    %c0_i32_0 = arith.constant 0 : i32
    %2 = arith.cmpi ne, %1, %c0_i32_0 : i32
    scf.if %2 {
      %cst_28 = arith.constant 0.000000e+00 : f32
      %53 = vector.broadcast %cst_28 : f32 to vector<8x128xf32>
      %c0_29 = arith.constant 0 : index
      %c0_30 = arith.constant 0 : index
      %c0_31 = arith.constant 0 : index
      %c0_32 = arith.constant 0 : index
      %54 = vector.load %arg5[%c0_29, %c0_30, %c0_31, %c0_32] : memref<1x1x8x128xf32, #tpu.memory_space<vmem>>, vector<1x1x8x128xf32>
      %55 = vector.shape_cast %54 : vector<1x1x8x128xf32> to vector<8x128xf32>
      %56 = vector.shape_cast %53 : vector<8x128xf32> to vector<1x1x8x128xf32>
      tpu.vector_store %arg5[%c0_29, %c0_30, %c0_31, %c0_32], %56 {strides = array<i32>} : memref<1x1x8x128xf32, #tpu.memory_space<vmem>>, vector<1x1x8x128xf32>,
    } else {
    }
    %c1_i32 = arith.constant 1 : i32
    %3 = arith.muli %arg1, %c1_i32 : i32
    %4 = arith.addi %3, %arg2 : i32
    %c8_i32 = arith.constant 8 : i32
    %5 = arith.muli %4, %c8_i32 : i32
    %6 = tpu.iota {dimensions = array<i32: 0>} : vector<8x128xi32>
    %c0_i32_1 = arith.constant 0 : i32
    %c8_i32_2 = arith.constant 8 : i32
    %7 = arith.muli %c0_i32_1, %c8_i32_2 : i32
    %8 = tpu.assume_multiple %7, 8 : i32
    %c0 = arith.constant 0 : index
    %c0_3 = arith.constant 0 : index
    %9 = arith.index_cast %8 : i32 to index
    %c0_4 = arith.constant 0 : index
    %10 = vector.load %arg3[%c0, %c0_3, %9, %c0_4] : memref<1x4x8x128xf32, #tpu.memory_space<vmem>>, vector<1x1x8x128xf32>
    %11 = vector.shape_cast %10 : vector<1x1x8x128xf32> to vector<8x128xf32>
    %cst = arith.constant 0.000000e+00 : f32
    %12 = vector.broadcast %cst : f32 to vector<8x128xf32>
    %c0_5 = arith.constant 0 : index
    %c1 = arith.constant 1 : index
    %13 = arith.index_cast %8 : i32 to index
    %c0_6 = arith.constant 0 : index
    %14 = vector.load %arg3[%c0_5, %c1, %13, %c0_6] : memref<1x4x8x128xf32, #tpu.memory_space<vmem>>, vector<1x1x8x128xf32>
    %15 = vector.shape_cast %14 : vector<1x1x8x128xf32> to vector<8x128xf32>
    %16 = arith.cmpf ogt, %15, %11 : vector<8x128xf32>
    %17 = arith.select %16, %15, %11 : vector<8x128xi1>, vector<8x128xf32>
    %cst_7 = arith.constant 5.000000e-01 : f32
    %18 = vector.broadcast %cst_7 : f32 to vector<8x128xf32>
    %19 = arith.select %16, %18, %12 : vector<8x128xi1>, vector<8x128xf32>
    %c0_8 = arith.constant 0 : index
    %c2 = arith.constant 2 : index
    %20 = arith.index_cast %8 : i32 to index
    %c0_9 = arith.constant 0 : index
    %21 = vector.load %arg3[%c0_8, %c2, %20, %c0_9] : memref<1x4x8x128xf32, #tpu.memory_space<vmem>>, vector<1x1x8x128xf32>
    %22 = vector.shape_cast %21 : vector<1x1x8x128xf32> to vector<8x128xf32>
    %23 = arith.cmpf ogt, %22, %17 : vector<8x128xf32>
    %24 = arith.select %23, %22, %17 : vector<8x128xi1>, vector<8x128xf32>
    %cst_10 = arith.constant 1.000000e+00 : f32
    %25 = vector.broadcast %cst_10 : f32 to vector<8x128xf32>
    %26 = arith.select %23, %25, %19 : vector<8x128xi1>, vector<8x128xf32>
    %c0_11 = arith.constant 0 : index
    %c3 = arith.constant 3 : index
    %27 = arith.index_cast %8 : i32 to index
    %c0_12 = arith.constant 0 : index
    %28 = vector.load %arg3[%c0_11, %c3, %27, %c0_12] : memref<1x4x8x128xf32, #tpu.memory_space<vmem>>, vector<1x1x8x128xf32>
    %29 = vector.shape_cast %28 : vector<1x1x8x128xf32> to vector<8x128xf32>
    %30 = arith.cmpf ogt, %29, %24 : vector<8x128xf32>
    %cst_13 = arith.constant 1.500000e+00 : f32
    %31 = vector.broadcast %cst_13 : f32 to vector<8x128xf32>
    %32 = arith.select %30, %31, %26 : vector<8x128xi1>, vector<8x128xf32>
    %c0_14 = arith.constant 0 : index
    %33 = arith.index_cast %8 : i32 to index
    %c0_15 = arith.constant 0 : index
    %34 = vector.load %arg4[%c0_14, %33, %c0_15] : memref<1x8x128xi32, #tpu.memory_space<vmem>>, vector<1x8x128xi32>
    %35 = vector.shape_cast %34 : vector<1x8x128xi32> to vector<8x128xi32>
    %36 = arith.sitofp %35 : vector<8x128xi32> to vector<8x128xf32>
    %cst_16 = arith.constant 5.000000e-01 : f32
    %37 = vector.broadcast %cst_16 : f32 to vector<8x128xf32>
    %38 = arith.mulf %37, %36 : vector<8x128xf32>
    %39 = arith.subf %32, %38 : vector<8x128xf32>
    %40 = arith.addi %5, %8 : i32
    %c8_i32_17 = arith.constant 8 : i32
    %41 = arith.subi %c8_i32_17, %40 : i32
    %42 = vector.broadcast %41 : i32 to vector<8x128xi32>
    %43 = arith.cmpi slt, %6, %42 : vector<8x128xi32>
    %44 = arith.mulf %39, %39 : vector<8x128xf32>
    %cst_18 = arith.constant 0.000000e+00 : f32
    %45 = vector.broadcast %cst_18 : f32 to vector<8x128xf32>
    %46 = arith.select %43, %44, %45 : vector<8x128xi1>, vector<8x128xf32>
    %c0_19 = arith.constant 0 : index
    %c0_20 = arith.constant 0 : index
    %c0_21 = arith.constant 0 : index
    %c0_22 = arith.constant 0 : index
    %47 = vector.load %arg5[%c0_19, %c0_20, %c0_21, %c0_22] : memref<1x1x8x128xf32, #tpu.memory_space<vmem>>, vector<1x1x8x128xf32>
    %48 = vector.shape_cast %47 : vector<1x1x8x128xf32> to vector<8x128xf32>
    %49 = arith.addf %48, %46 : vector<8x128xf32>
    %c0_23 = arith.constant 0 : index
    %c0_24 = arith.constant 0 : index
    %c0_25 = arith.constant 0 : index
    %c0_26 = arith.constant 0 : index
    %50 = vector.load %arg5[%c0_23, %c0_24, %c0_25, %c0_26] : memref<1x1x8x128xf32, #tpu.memory_space<vmem>>, vector<1x1x8x128xf32>
    %51 = vector.shape_cast %50 : vector<1x1x8x128xf32> to vector<8x128xf32>
    %52 = vector.shape_cast %49 : vector<8x128xf32> to vector<1x1x8x128xf32>
    tpu.vector_store %arg5[%c0_23, %c0_24, %c0_25, %c0_26], %52 {strides = array<i32>} : memref<1x1x8x128xf32, #tpu.memory_space<vmem>>, vector<1x1x8x128xf32>,
    %c1_i32_27 = arith.constant 1 : i32
    return
  }
  func.func @transform_0(%arg0: i32, %arg1: i32, %arg2: i32) -> (i32, i32, i32, i32) {
    %c1_i32 = arith.constant 1 : i32
    %0 = arith.muli %arg1, %c1_i32 : i32
    %1 = arith.addi %0, %arg2 : i32
    %c0_i32 = arith.constant 0 : i32
    %2 = arith.minsi %1, %c0_i32 : i32
    %c0_i32_0 = arith.constant 0 : i32
    %c0_i32_1 = arith.constant 0 : i32
    %c0_i32_2 = arith.constant 0 : i32
    return %arg0, %c0_i32_0, %2, %c0_i32_1 : i32, i32, i32, i32
  }
  func.func @transform_1(%arg0: i32, %arg1: i32, %arg2: i32) -> (i32, i32, i32) {
    %c1_i32 = arith.constant 1 : i32
    %0 = arith.muli %arg1, %c1_i32 : i32
    %1 = arith.addi %0, %arg2 : i32
    %c0_i32 = arith.constant 0 : i32
    %2 = arith.minsi %1, %c0_i32 : i32
    %c0_i32_0 = arith.constant 0 : i32
    %c0_i32_1 = arith.constant 0 : i32
    return %arg0, %2, %c0_i32_0 : i32, i32, i32
  }
  func.func @transform_2(%arg0: i32, %arg1: i32, %arg2: i32) -> (i32, i32, i32, i32) {
    %c0_i32 = arith.constant 0 : i32
    %c0_i32_0 = arith.constant 0 : i32
    %c0_i32_1 = arith.constant 0 : i32
    return %arg0, %arg1, %c0_i32, %c0_i32_0 : i32, i32, i32, i32
  }
}

</mosaic_0001>

<bundles_post_ra>
// kernel: tpu_custom_call.1
= control target key start
LH: loop header
LB: loop body
LE: loop exit
PB: predicated region body
PF: predicated region fallthrough
CT: control target
= control target key end

     0   :  { %7 = vsyncpa [#allocation3], 0  ;;  %s891_s0 = inlined_call_operand.hbm [shape: f32[2,4,8,128], index: 0, kind: input, shape index: {}]   ;;  %s892_s1 = inlined_call_operand.hbm [shape: s32[2,8,128], index: 1, kind: input, shape index: {}]   ;;  %s893_s2 = inlined_call_operand.hbm [shape: f32[2,1,8,128], index: 2, kind: output, shape index: {}]  }
   0x1   :  { %9 = vsyncpa [#allocation3 + $0x1], 0 }
   0x2   :  { %10 = vsyncpa [#allocation6], 0 }
   0x3   :  { %12 = vsyncpa [#allocation6 + $0x1], 0 }
   0x4   :  { %13 = vsyncpa [#allocation4], 0 }
   0x5   :  { %15 = vsyncpa [#allocation4 + $0x1], 0  ;;  %s676_s9 = smov 0   ;;  %s678_s10 = smov 0  }
   0x6   :  { %s680_s11 = smov 0   ;;  %s682_s12 = smov 0  }
   0x7   :  { %s684_s13 = smov 0   ;;  %s686_s14 = smov 0  }
   0x8 LB: > { %s416_s15 = sadd.s32 4294967295, %s653_s14   ;;  %s417_s16 = sadd.s32 4294967294, %s653_s14   ;;  %s653_s14 = sphi %s686_s14, %s21_s14   ;;  %s649_s13 = sphi %s684_s13, %s912_s13   ;;  %s645_s12 = sphi %s682_s12, %s911_s12   ;;  %s641_s11 = sphi %s680_s11, %s910_s11   ;;  %s637_s10 = sphi %s678_s10, %s909_s10   ;;  %s633_s9 = sphi %s676_s9, %s908_s9  }
   0x9   : > { %s40_s17 = sadd.s32 1, %s649_s13  ;;  %s55_s18 = sadd.s32 1, %s641_s11 }
   0xa   : > { %p42_p0 = scmp.ge.s32.totalorder %s40_s17, 2  ;;  %p62_p1 = scmp.ne.s32.totalorder %s641_s11, %s637_s10 }
   0xb   : > { %p63_p2 = scmp.eq.s32.totalorder %s653_s14, 0  ;;  %p68_p3 = scmp.ne.s32.totalorder %s637_s10, %s633_s9 }
   0xc   : > { %s914_s17 = smov (%p42_p0, %s40_s17), 0  ;;  %p69_p5 = scmp.eq.s32.totalorder %s416_s15, 0 }
   0xd   : > { %p717_p4 = por %p63_p2, %p62_p1  ;;  %s50_s20 = ssub.s32 %s649_s13, %s914_s17 }
   0xe   : > { %p128_p6 = scmp.eq.s32.totalorder %s416_s15, 1  ;;  %p53_p7 = scmp.eq.s32.totalorder %s50_s20, 0 }
   0xf   : > { %p723_p8 = por %p69_p5, %p68_p3  ;;  %p134_p10 = scmp.eq.s32.totalorder %s417_s16, 1 }
  0x10   : > { %p727_p9 = por %p128_p6, %p62_p1  ;;  %p454_p13 = scmp.lt.s32.totalorder %s653_s14, 2 }
  0x11   : > { %s897_s21 = scalar_select %p723_p8, 1, 0 }
  0x12   : > { %s898_s22 = scalar_select %p727_p9, 1, 0 }
  0x13   : > { %s732_s23 = scalar_select %p53_p7, %s641_s11, %s55_s18  }
  0x14   : > { %p734_p11 = por %p134_p10, %p68_p3  ;;  %s741_s25 = sand.u32 1, %s641_s11  }
  0x15   : > { %s420_s26 = sshll.u32 %s741_s25, 5  ;;  %s436_s27 = sshll.u32 %s649_s13, 9 }
  0x16   : > { %s899_s24 = scalar_select %p734_p11, 1, 0 }
  0x17   : > { %s748_s30 = scalar_lea.hbm %s891_s0, %s436_s27  ;;  %s158_s3 = scalar_lea.vmem [#allocation2], %s420_s26 }
  0x18   : > { %s169_s4 = sshll.u32 %s158_s3, 4  ;;  %p754_p0 = pnand %p454_p13, %p717_p4  ;;  %s750_s4 = int_to_ptr.vmem [resolvable:$true] %s169_s4 }
  0x19   : > { %s155_s6 = scalar_lea.sflag [#allocation3], %s741_s25  ;;  %s507_s7 = scalar_lea.hbm %s748_s30, 512 }
  0x1a   : > { %p508_p2 = scmp.ne.s32.totalorder %s748_s30, %s507_s7  ;;  %p509_p3 = pneg %p754_p0 }
  0x1b   : > { %s512_s16 = scalar_lea.hbm %s891_s0, 1024  ;;  %p513_p4 = scmp.lt.u32.totalorder %s748_s30, %s891_s0 }
  0x1c   : > { %p510_p5 = pnand %p509_p3, %p508_p2  ;;  %p514_p7 = scmp.lt.u32.totalorder %s512_s16, %s507_s7 }
  0x1d   : > { %p516_p13 = scmp.lt.u32.totalorder %s507_s7, %s748_s30 }
  0x1e   : > { %p511_p6 = pneg %p510_p5  ;;  %p515_p10 = por %p514_p7, %p513_p4 }
  0x20   : > { %p517_p12 = por %p516_p13, %p515_p10 }
  0x22   : > { %p518_p1 = pnand %p517_p12, %p511_p6 }
  0x24   : > { %521 = shalt.err (!%p518_p1)
}
  0x25   : > { %s522_s20 = scalar_lea.vmem %s750_s4, 512  ;;  %s655_s26 = smov [#allocation2]  }
  0x26   : > { %p523_p2 = scmp.ne.s32.totalorder %s750_s4, %s522_s20  ;;  %s527_s27 = sshll.u32 %s655_s26, 4  ;;  %s528_s27 = int_to_ptr.vmem [resolvable:$false] %s527_s27 }
  0x27   : > { %s529_s28 = scalar_lea.vmem %s528_s27, 1024  ;;  %p530_p9 = scmp.lt.s32.totalorder %s750_s4, %s528_s27 }
  0x28   : > { %p525_p5 = pnand %p523_p2, %p509_p3  ;;  %p531_p4 = scmp.lt.s32.totalorder %s529_s28, %s522_s20 }
  0x2a   : > { %p526_p11 = pneg %p525_p5  ;;  %p532_p7 = por %p531_p4, %p530_p9 }
  0x2c   : > { %p533_p10 = pnand %p532_p7, %p526_p11 }
  0x2e   : > { %536 = shalt.err (!%p533_p10)
}
  0x2f   : > { %s656_s29 = smov 128   ;;  %s657_s3 = smov 8  }
  0x30   : > { %446 = dma.hbm_to_vmem [thread:$0]  (!%p754_p0), %s748_s30, 512, %s750_s4, %s155_s6, %s656_s29, %s656_s29, %s657_s3  }
  0x31   : > { %p199_p12 = scmp.lt.s32.totalorder %s653_s14, 3  ;;  %s423_s7 = sshll.u32 %s741_s25, 3 }
  0x32   : > { %s424_s8 = sshll.u32 %s649_s13, 7  ;;  %p901_p9 = scmp.ge.s32.totalorder %s653_s14, 1 }
  0x33   : > { %s799_s19 = scalar_lea.hbm %s892_s1, %s424_s8  ;;  %s183_s20 = scalar_lea.vmem [#allocation5], %s423_s7 }
  0x34   : > { %p792_p11 = pnand %p901_p9, %p199_p12  ;;  %s194_s26 = sshll.u32 %s183_s20, 4  ;;  %s195_s26 = int_to_ptr.vmem [resolvable:$true] %s194_s26 }
  0x35   : > { %s180_s30 = scalar_lea.sflag [#allocation6], %s741_s25  ;;  %s537_s4 = scalar_lea.hbm %s799_s19, 128 }
  0x36   : > { %s902_s15 = scalar_select %p792_p11, 1, 0 }
  0x37   : > { %p538_p1 = scmp.ne.s32.totalorder %s799_s19, %s537_s4  ;;  %s542_s28 = scalar_lea.hbm %s892_s1, 256 }
  0x38   : > { %p543_p2 = scmp.lt.u32.totalorder %s799_s19, %s892_s1  ;;  %p544_p5 = scmp.lt.u32.totalorder %s542_s28, %s537_s4 }
  0x39   : > { %p540_p6 = pnand %p538_p1, %p509_p3  ;;  %p546_p7 = scmp.lt.u32.totalorder %s537_s4, %s799_s19 }
  0x3a   : > { %p545_p4 = por %p544_p5, %p543_p2 }
  0x3b   : > { %p541_p13 = pneg %p540_p6 }
  0x3c   : > { %p547_p10 = por %p546_p7, %p545_p4 }
  0x3e   : > { %p548_p12 = pnand %p547_p10, %p541_p13 }
  0x40   : > { %551 = shalt.err (!%p548_p12)
}
  0x41   : > { %s552_s25 = scalar_lea.vmem %s195_s26, 128  ;;  %s658_s7 = smov [#allocation5]  }
  0x42   : > { %p553_p9 = scmp.ne.s32.totalorder %s195_s26, %s552_s25  ;;  %s557_s8 = sshll.u32 %s658_s7, 4  ;;  %s558_s8 = int_to_ptr.vmem [resolvable:$false] %s557_s8 }
  0x43   : > { %s559_s16 = scalar_lea.vmem %s558_s8, 256  ;;  %p560_p8 = scmp.lt.s32.totalorder %s195_s26, %s558_s8 }
  0x44   : > { %p555_p1 = pnand %p553_p9, %p509_p3  ;;  %p561_p11 = scmp.lt.s32.totalorder %s559_s16, %s552_s25 }
  0x46   : > { %p556_p6 = pneg %p555_p1  ;;  %p562_p2 = por %p561_p11, %p560_p8 }
  0x48   : > { %p563_p5 = pnand %p562_p2, %p556_p6 }
  0x4a   : > { %566 = shalt.err (!%p563_p5)
}
  0x4b   : > { %449 = dma.hbm_to_vmem [thread:$0]  (!%p754_p0), %s799_s19, 128, %s195_s26, %s180_s30  }
  0x4c   : > { %p903_p13 = scmp.ne.s32.totalorder %s902_s15, 0 }
  0x4d   : > { %s824_s18 = sand.u32 (!%p903_p13), 1, %s637_s10   ;;  %p904_p3 = scmp.ne.s32.totalorder (!%p903_p13), %s897_s21, 0 }
  0x4e   : > { %203 = sbr.rel (%p903_p13) target bundleno = 115 (0x73), region = 28  ;;  %s426_s20 = sshll.u32 (!%p903_p13), %s824_s18, 5 }
  0x4f   : > { %s206_s4 = scalar_lea.sflag (!%p903_p13), [#allocation3], %s824_s18  ;;  %s209_s6 = scalar_lea.vmem (!%p903_p13), [#allocation2], %s426_s20 }
  0x55   : > { %620 = dma.done.wait (%p904_p3), %s206_s4, 512  }
  0x56   : > { %622 = vsyncadd (%p904_p3), %s206_s4, 4294966784  ;;  %s427_s5 = sshll.u32 %s824_s18, 3  ;;  %s215_s15 = scalar_lea.sflag [#allocation6], %s824_s18 }
  0x57   : > { %s218_s19 = scalar_lea.vmem [#allocation5], %s427_s5 }
  0x58   : > { %624 = dma.done.wait (%p904_p3), %s215_s15, 128  }
  0x59   : > { %626 = vsyncadd (%p904_p3), %s215_s15, 4294967168  ;;  %v259_v0 = vld [vmem:[%s209_s6] sm:$0xff]  ;;  %v429_v1 = vld [vmem:[%s209_s6 + $0x8] sm:$0xff]  ;;  %v659_v5 = vmov 0.0   ;;  %s433_s21 = sshll.u32 %s645_s12, 7  ;;  %s243_s26 = scalar_lea.vmem [#allocation7], %s427_s5 }
  0x5a   : > { %v430_v2 = vld [vmem:[%s209_s6 + $0x10] sm:$0xff]  ;;  %vm263_vm0 = vcmp.gt.f32.partialorder %v429_v1, %v259_v0  ;;  %v277_v3 = vld [vmem:[%s218_s19] sm:$0xff]  ;;  %v431_v7 = vld [vmem:[%s209_s6 + $0x18] sm:$0xff]  ;;  %s305_s30 = sshll.u32 %s243_s26, 4  ;;  %s842_s29 = scalar_lea.hbm %s893_s2, %s433_s21  ;;  %s844_s30 = int_to_ptr.vmem [resolvable:$true] %s305_s30 }
  0x5b   : > { %v264_v4 = vsel %vm263_vm0, %v429_v1, %v259_v0  ;;  %v265_v6 = vsel %vm263_vm0, 0.5, %v659_v5  ;;  %v278_v8 = vcvt.s32.f32 %v277_v3  ;;  %s291_s3 = scalar_lea.sflag [#allocation4], %s824_s18  ;;  %s567_s25 = scalar_lea.vmem %s844_s30, 128 }
  0x5c   : > { %vm269_vm1 = vcmp.gt.f32.partialorder %v430_v2, %v264_v4  ;;  %p568_p8 = scmp.ne.s32.totalorder %s844_s30, %s567_s25  ;;  %p905_p0 = scmp.ne.s32.totalorder %s898_s22, 0 }
  0x5d   : > { %v270_v9 = vsel %vm269_vm1, %v430_v2, %v264_v4  ;;  %v271_v10 = vsel %vm269_vm1, 1.0, %v265_v6  ;;  %v279_v11 = vmul.f32 0.5, %v278_v8  ;;  %s660_s12 = smov [#allocation7]  }
  0x5e   : > { %vm275_vm2 = vcmp.gt.f32.partialorder %v431_v7, %v270_v9  ;;  %p569_p11 = pnand %p568_p8, %p905_p0  ;;  %s571_s7 = sshll.u32 %s660_s12, 4  ;;  %s572_s7 = int_to_ptr.vmem [resolvable:$false] %s571_s7 }
  0x5f   : > { %v276_v12 = vsel %vm275_vm2, 1.5, %v271_v10  ;;  %s573_s8 = scalar_lea.vmem %s572_s7, 256  ;;  %p574_p7 = scmp.lt.s32.totalorder %s844_s30, %s572_s7 }
  0x60   : > { %v280_v13 = vsub.f32 %v276_v12, %v279_v11  ;;  %p570_p4 = pneg %p569_p11  ;;  %p575_p10 = scmp.lt.s32.totalorder %s573_s8, %s567_s25 }
  0x62   : > { %v285_v14 = vmul.f32 %v280_v13, %v280_v13  ;;  %p576_p12 = por %p575_p10, %p574_p7 }
  0x64   : > { %289 = vst [vmem:[%s243_s26] sm:$0xff] %v285_v14  ;;  %p577_p9 = pnand %p576_p12, %p570_p4 }
  0x66   : > { %580 = shalt.err (!%p577_p9)
}
  0x67   : > { %s581_s16 = scalar_lea.hbm %s842_s29, 128  ;;  %s585_s4 = scalar_lea.hbm %s893_s2, 256 }
  0x68   : > { %p582_p1 = scmp.ne.s32.totalorder %s842_s29, %s581_s16  ;;  %p586_p5 = scmp.lt.u32.totalorder %s842_s29, %s893_s2 }
  0x69   : > { %p587_p13 = scmp.lt.u32.totalorder %s585_s4, %s581_s16  ;;  %p589_p8 = scmp.lt.u32.totalorder %s581_s16, %s842_s29 }
  0x6a   : > { %p583_p6 = pnand %p582_p1, %p905_p0 }
  0x6b   : > { %p588_p3 = por %p587_p13, %p586_p5 }
  0x6c   : > { %p584_p2 = pneg %p583_p6 }
  0x6d   : > { %p590_p11 = por %p589_p8, %p588_p3 }
  0x6f   : > { %p591_p4 = pnand %p590_p11, %p584_p2 }
  0x71   : > { %594 = shalt.err (!%p591_p4)
}
  0x72   : > { %441 = dma.vmem_to_hbm [thread:$0]  (%p905_p0), %s844_s30, 128, %s842_s29, %s291_s3  }
  0x73 PF: > { %s317_s15 = sand.u32 1, %s633_s9   ;;  %p906_p7 = scmp.ne.s32.totalorder %s899_s24, 0 }
  0x74   : > { %p907_p10 = scmp.ge.s32.totalorder %s653_s14, 2  ;;  %s318_s19 = scalar_lea.sflag [#allocation4], %s317_s15 }
  0x76   : > { %p451_p12 = pnand %p907_p10, %p906_p7 }
  0x78   : > { %628 = dma.done.wait (!%p451_p12), %s318_s19, 128  }
  0x79   : > { %630 = vsyncadd (!%p451_p12), %s318_s19, 4294967168  ;;  %s21_s14 = sadd.s32 1, %s653_s14   ;;  %s908_s9 = smov %s637_s10 }
  0x7a   : > { %p18_p9 = scmp.ge.s32.totalorder %s21_s14, 4   ;;  %s909_s10 = smov %s641_s11 }
  0x7b   : > { %s910_s11 = smov %s732_s23  ;;  %s911_s12 = smov %s649_s13 }
  0x7c   : > { %s912_s13 = smov %s914_s17  ;;  %20 = sbr.rel (!%p18_p9) target bundleno = 8 (0x8), region = 93 }
  0x83   :  { %323 = vsyncpa [#allocation3], 1 }
  0x84   :  { %325 = vsyncpa [#allocation3 + $0x1], 1 }
  0x85   :  { %326 = vsyncpa [#allocation6], 1 }
  0x86   :  { %328 = vsyncpa [#allocation6 + $0x1], 1 }
  0x87   :  { %329 = vsyncpa [#allocation4], 1 }
  0x88   :  { %331 = vsyncpa [#allocation4 + $0x1], 1 }

</bundles_post_ra>
